<compile_context>
chip_gen: v7x
topology: tpu7x:2x2x1
jax: 0.10.0
libtpu: 0.0.40
codegen_flags: <defaults>
</compile_context>

<pallas_src>
from itertools import permutations

import numpy as np
import jax
import jax.numpy as jnp
from jax.experimental import pallas as pl
from jax.experimental.pallas import tpu as pltpu


def _check_temporal_condition(p):
    return all(abs(p[i] - i) <= 2 for i in range(len(p)))


def generate_permutations(num_clip):
    perms = [p for p in permutations(range(num_clip)) if _check_temporal_condition(p)]
    return np.asarray(perms, dtype=np.int32)            # [num_perm, num_clip]


# ----------------------------- Pallas kernel -------------------------------

def _logits_kernel(xi_ref, xj_ref, h_ref, s_ref, out_ref):
    """Single-step kernel over the whole stacked batch.

      sim_flat[b, i*n+j] = -<x[b, i], x[b, j]>                        [B, n*n]
      diff[b, p*nn+k]    = sim_flat[b, k] - sim_flat[b, kron(p)[k]]   [B, P*n*n]
      dist2[b, p]        = sum_k diff[b, p*nn+k]^2                    [B, P]
      out[b, p]          = -50 * sqrt(dist2)    (== softmin(50*dist) logits)
    """
    # VPU multiply + XLU lane reduction: exact self-similarity, no batched
    # matmuls, no in-kernel reshape.
    sim_flat = -jnp.sum(xi_ref[...] * xj_ref[...], axis=-1)           # [B, n*n]
    # One flattened matmul replaces 2*num_perm tiny 4x4 batched matmuls.
    diff = jnp.dot(sim_flat, h_ref[...],
                   preferred_element_type=jnp.float32)                # [B, P*n*n]
    dist2 = jnp.dot(diff * diff, s_ref[...],
                    preferred_element_type=jnp.float32)               # [B, P]
    out_ref[...] = -50.0 * jnp.sqrt(dist2)


def tda_logits(x, H, S, num_perm):
    """x: [B, n, d] f32; H: [n*n, num_perm*n*n]; S: [num_perm*n*n, num_perm].

    Returns softmin logits (-50 * Frobenius distance): [B, num_perm] f32.
    """
    B, n, d = x.shape
    nn_ = n * n
    # Layout plumbing in the wrapper (fused by XLA): expand x so the kernel can
    # form the flattened self-similarity with a pure elementwise+reduce.
    xi = jnp.repeat(x, n, axis=1)        # row i*n+j = x[b, i]   -> [B, n*n, d]
    xj = jnp.tile(x, (1, n, 1))          # row i*n+j = x[b, j]   -> [B, n*n, d]
    return pl.pallas_call(
        _logits_kernel,
        out_shape=jax.ShapeDtypeStruct((B, num_perm), jnp.float32),
        grid_spec=pltpu.PrefetchScalarGridSpec(
            num_scalar_prefetch=0,
            grid=(1,),
            in_specs=[
                pl.BlockSpec((B, nn_, d), lambda i: (0, 0, 0)),
                pl.BlockSpec((B, nn_, d), lambda i: (0, 0, 0)),
                pl.BlockSpec((nn_, num_perm * nn_), lambda i: (0, 0)),
                pl.BlockSpec((num_perm * nn_, num_perm), lambda i: (0, 0)),
            ],
            out_specs=pl.BlockSpec((B, num_perm), lambda i: (0, 0)),
        ),
        compiler_params=pltpu.CompilerParams(
            dimension_semantics=("arbitrary",)),
    )(xi, xj, H, S)


# ------------------------------- TDA module -------------------------------

class TDA:
    def __init__(self, num_clip):
        self.num_clip = num_clip
        perm_np = generate_permutations(num_clip)                  # [P, n]
        self.num_perm = int(perm_np.shape[0])
        self.perm = jnp.asarray(perm_np)                           # [P, n] int32

        n = num_clip
        nn_ = n * n
        P = self.num_perm
        # Flattened (row-major) index of the doubly-permuted similarity:
        #   perm_sim[p].flat[i*n+j] = sim.flat[perm[p,i]*n + perm[p,j]]
        flat_idx = (perm_np[:, :, None] * n + perm_np[:, None, :]).reshape(P, nn_)

        cols = np.arange(P * nn_)
        k = cols % nn_
        # H: sim_flat @ H gives (sim - perm_sim) for ALL permutations at once.
        H = np.zeros((nn_, P * nn_), np.float32)
        H[k, cols] += 1.0
        H[flat_idx.reshape(-1), cols] -= 1.0
        # S: per-permutation block sum of the squared differences.
        S = np.zeros((P * nn_, P), np.float32)
        S[cols, cols // nn_] = 1.0

        self.H = jnp.asarray(H)
        self.S = jnp.asarray(S)

    def generate_logits(self, embd_stacked):
        # softmin(dist * 50) == softmax(-50 * dist); logits emitted directly
        # by the kernel epilogue.
        return tda_logits(embd_stacked, self.H, self.S, self.num_perm)

    def __call__(self, video_embd, text_embd, key):
        b = video_embd.shape[0]
        # One kernel launch covers both modalities.
        x_all = jnp.concatenate([video_embd, text_embd], axis=0)   # [2b, n, d]
        logits = self.generate_logits(x_all)                       # [2b, P]

        # TODO(synk): torch.distributions.Categorical sampling has no in-kernel
        # Pallas equivalent; it is done with jax.random.categorical here.
        kv, kt = jax.random.split(key)
        idx_v = jax.random.categorical(kv, logits[:b], axis=-1)    # [b]
        idx_t = jax.random.categorical(kt, logits[b:], axis=-1)    # [b]

        perm_v = self.perm[idx_v]                                  # [b, n]
        perm_t = self.perm[idx_t]
        # Trivial per-row gather left to XLA (perf review: a kernel launch
        # costs orders of magnitude more than this 512-byte gather).
        video_out = jnp.take_along_axis(video_embd, perm_v[:, :, None], axis=1)
        text_out = jnp.take_along_axis(text_embd, perm_t[:, :, None], axis=1)
        return video_out, text_out


# --------------------------------- main ------------------------------------

if __name__ == "__main__":
    b, num_clip, d = 2, 4, 32
    key = jax.random.PRNGKey(0)
    k1, k2, k3 = jax.random.split(key, 3)
    video = jax.random.normal(k1, (b, num_clip, d), dtype=jnp.float32)
    text = jax.random.normal(k2, (b, num_clip, d), dtype=jnp.float32)

    tda = TDA(num_clip)
    v_out, t_out = tda(video, text, k3)
    jax.block_until_ready((v_out, t_out))

    # Correctness check of the Pallas logits kernel vs pure JAX reference.
    def ref_logits(x, perm):
        sim = -jnp.einsum("bnd,bmd->bnm", x, x)                    # [B, n, n]
        ps = sim[:, perm[:, :, None], perm[:, None, :]]            # [B, P, n, n]
        dist = jnp.sqrt(jnp.sum((sim[:, None] - ps) ** 2, axis=(2, 3)))
        return -50.0 * dist

    x_all = jnp.concatenate([video, text], axis=0)
    got = tda.generate_logits(x_all)
    want = ref_logits(x_all, tda.perm)
    assert got.shape == (2 * b, tda.num_perm)
    assert jnp.allclose(got, want, atol=1e-3, rtol=1e-4), (got, want)
    assert v_out.shape == video.shape and t_out.shape == text.shape

    print("KERNEL_OK")
</pallas_src>

<mosaic_0001>
module attributes {stable_mosaic.version = 11 : i64} {
  func.func @_logits_kernel(%arg0: i32, %arg1: memref<4x16x32xf32, #tpu.memory_space<vmem>>, %arg2: memref<4x16x32xf32, #tpu.memory_space<vmem>>, %arg3: memref<16x224xf32, #tpu.memory_space<vmem>>, %arg4: memref<224x14xf32, #tpu.memory_space<vmem>>, %arg5: memref<4x14xf32, #tpu.memory_space<vmem>>) attributes {dimension_semantics = [#tpu.dimension_semantics<arbitrary>], iteration_bounds = array<i64: 1>, scalar_prefetch = 0 : i64, scratch_operands = 0 : i64, tpu.core_type = #tpu.core_type<tc>, window_params = [{pipeline_mode = #tpu.pipeline_mode<synchronous>, transform_indices = @transform_0, window_bounds = array<i64: 4, 16, 32>}, {pipeline_mode = #tpu.pipeline_mode<synchronous>, transform_indices = @transform_1, window_bounds = array<i64: 4, 16, 32>}, {pipeline_mode = #tpu.pipeline_mode<synchronous>, transform_indices = @transform_2, window_bounds = array<i64: 16, 224>}, {pipeline_mode = #tpu.pipeline_mode<synchronous>, transform_indices = @transform_3, window_bounds = array<i64: 224, 14>}, {pipeline_mode = #tpu.pipeline_mode<synchronous>, transform_indices = @transform_4, window_bounds = array<i64: 4, 14>}]} {
    %c0 = arith.constant 0 : index
    %c0_0 = arith.constant 0 : index
    %c0_1 = arith.constant 0 : index
    %0 = vector.load %arg1[%c0, %c0_0, %c0_1] : memref<4x16x32xf32, #tpu.memory_space<vmem>>, vector<4x16x32xf32>
    %c0_2 = arith.constant 0 : index
    %c0_3 = arith.constant 0 : index
    %c0_4 = arith.constant 0 : index
    %1 = vector.load %arg2[%c0_2, %c0_3, %c0_4] : memref<4x16x32xf32, #tpu.memory_space<vmem>>, vector<4x16x32xf32>
    %2 = arith.mulf %0, %1 : vector<4x16x32xf32>
    %cst = arith.constant dense<0.000000e+00> : vector<4x16xf32>
    %3 = vector.multi_reduction <add>, %2, %cst [2] : vector<4x16x32xf32> to vector<4x16xf32>
    %cst_5 = arith.constant 0.000000e+00 : f32
    %4 = vector.broadcast %cst_5 : f32 to vector<4x16xf32>
    %5 = arith.subf %4, %3 : vector<4x16xf32>
    %c0_6 = arith.constant 0 : index
    %c0_7 = arith.constant 0 : index
    %6 = vector.load %arg3[%c0_6, %c0_7] : memref<16x224xf32, #tpu.memory_space<vmem>>, vector<16x224xf32>
    %cst_8 = arith.constant dense<0.000000e+00> : vector<4x224xf32>
    %7 = tpu.matmul %5, %6, %cst_8 {dimension_numbers = #tpu.dot_dimension_numbers<[1], [0], [0], [1], [0, 0, 1, 1], [], []>} : vector<4x16xf32>, vector<16x224xf32>, vector<4x224xf32> -> vector<4x224xf32>
    %8 = arith.mulf %7, %7 : vector<4x224xf32>
    %c0_9 = arith.constant 0 : index
    %c0_10 = arith.constant 0 : index
    %9 = vector.load %arg4[%c0_9, %c0_10] : memref<224x14xf32, #tpu.memory_space<vmem>>, vector<224x14xf32>
    %cst_11 = arith.constant dense<0.000000e+00> : vector<4x14xf32>
    %10 = tpu.matmul %8, %9, %cst_11 {dimension_numbers = #tpu.dot_dimension_numbers<[1], [0], [0], [1], [0, 0, 1, 1], [], []>} : vector<4x224xf32>, vector<224x14xf32>, vector<4x14xf32> -> vector<4x14xf32>
    %11 = math.sqrt %10 : vector<4x14xf32>
    %cst_12 = arith.constant -5.000000e+01 : f32
    %12 = vector.broadcast %cst_12 : f32 to vector<4x14xf32>
    %13 = arith.mulf %12, %11 : vector<4x14xf32>
    %c0_13 = arith.constant 0 : index
    %c0_14 = arith.constant 0 : index
    %14 = vector.load %arg5[%c0_13, %c0_14] : memref<4x14xf32, #tpu.memory_space<vmem>>, vector<4x14xf32>
    tpu.vector_store %arg5[%c0_13, %c0_14], %13 {strides = array<i32>} : memref<4x14xf32, #tpu.memory_space<vmem>>, vector<4x14xf32>,
    return
  }
  func.func @transform_0(%arg0: i32) -> (i32, i32, i32) {
    %c0_i32 = arith.constant 0 : i32
    %c0_i32_0 = arith.constant 0 : i32
    %c0_i32_1 = arith.constant 0 : i32
    %c0_i32_2 = arith.constant 0 : i32
    return %c0_i32, %c0_i32_0, %c0_i32_1 : i32, i32, i32
  }
  func.func @transform_1(%arg0: i32) -> (i32, i32, i32) {
    %c0_i32 = arith.constant 0 : i32
    %c0_i32_0 = arith.constant 0 : i32
    %c0_i32_1 = arith.constant 0 : i32
    %c0_i32_2 = arith.constant 0 : i32
    return %c0_i32, %c0_i32_0, %c0_i32_1 : i32, i32, i32
  }
  func.func @transform_2(%arg0: i32) -> (i32, i32) {
    %c0_i32 = arith.constant 0 : i32
    %c0_i32_0 = arith.constant 0 : i32
    %c0_i32_1 = arith.constant 0 : i32
    return %c0_i32, %c0_i32_0 : i32, i32
  }
  func.func @transform_3(%arg0: i32) -> (i32, i32) {
    %c0_i32 = arith.constant 0 : i32
    %c0_i32_0 = arith.constant 0 : i32
    %c0_i32_1 = arith.constant 0 : i32
    return %c0_i32, %c0_i32_0 : i32, i32
  }
  func.func @transform_4(%arg0: i32) -> (i32, i32) {
    %c0_i32 = arith.constant 0 : i32
    %c0_i32_0 = arith.constant 0 : i32
    %c0_i32_1 = arith.constant 0 : i32
    return %c0_i32, %c0_i32_0 : i32, i32
  }
}

</mosaic_0001>

<bundles_post_ra>
// kernel: tpu_custom_call.1
= control target key start
LH: loop header
LB: loop body
LE: loop exit
PB: predicated region body
PF: predicated region fallthrough
CT: control target
= control target key end

     0   :  { %vm42_vm0 = vcmask 261120   ;;  %s608_s0 = inlined_call_operand.vmem [shape: f32[4,16,32], index: 0, kind: input, shape index: {}]   ;;  %s609_s1 = inlined_call_operand.vmem [shape: f32[4,16,32], index: 1, kind: input, shape index: {}]   ;;  %s610_s2 = inlined_call_operand.vmem [shape: f32[16,224], index: 2, kind: input, shape index: {}]   ;;  %s611_s3 = inlined_call_operand.vmem [shape: f32[224,14], index: 3, kind: input, shape index: {}]   ;;  %s612_s4 = inlined_call_operand.hbm [shape: f32[4,14], index: 4, kind: output, shape index: {}]  }
   0x1   :  { %v20_v0 = vld [vmem:[%s608_s0 + $0x10] sm:$0xff]  ;;  %v18_v2 = vld [vmem:[%s608_s0] sm:$0xff]  ;;  %v21_v5 = vld [vmem:[%s608_s0 + $0x18] sm:$0xff] }
   0x2   :  { %v28_v1 = vld [vmem:[%s609_s1 + $0x10] sm:$0xff]  ;;  %v26_v4 = vld [vmem:[%s609_s1] sm:$0xff]  ;;  %v29_v6 = vld [vmem:[%s609_s1 + $0x18] sm:$0xff] }
   0x3   :  { %v36_v3 = vmul.f32 %v28_v1, %v20_v0  ;;  %v34_v7 = vmul.f32 %v26_v4, %v18_v2  ;;  %v37_v8 = vmul.f32 %v29_v6, %v21_v5  ;;  %v19_v9 = vld [vmem:[%s608_s0 + $0x8] sm:$0xff]  ;;  %v22_v15 = vld [vmem:[%s608_s0 + $0x20] sm:$0xff] }
   0x4   :  { %v27_v10 = vld [vmem:[%s609_s1 + $0x8] sm:$0xff]  ;;  %v30_v16 = vld [vmem:[%s609_s1 + $0x20] sm:$0xff] }
   0x5   :  { %v23_v11 = vld [vmem:[%s608_s0 + $0x28] sm:$0xff]  ;;  %v49_v12 = vsel %vm42_vm0, %v36_v3, 0.0  ;;  %v35_v13 = vmul.f32 %v27_v10, %v19_v9  ;;  %v43_v17 = vsel %vm42_vm0, %v34_v7, 0.0  ;;  %v52_v18 = vsel %vm42_vm0, %v37_v8, 0.0 }
   0x6   :  { %v31_v14 = vld [vmem:[%s609_s1 + $0x28] sm:$0xff]  ;;  %50 = vadd.xlane.f32.xlu1 %v49_v12  ;;  %44 = vadd.xlane.f32.xlu0 %v43_v17 }
   0x7   :  { %v39_v19 = vmul.f32 %v31_v14, %v23_v11 }
   0x8   :  { %9 = vsyncpa [#allocation3], 0  ;;  %v46_v20 = vsel %vm42_vm0, %v35_v13, 0.0  ;;  %v38_v21 = vmul.f32 %v30_v16, %v22_v15  ;;  %v25_v22 = vld [vmem:[%s608_s0 + $0x38] sm:$0xff]  ;;  %v24_v24 = vld [vmem:[%s608_s0 + $0x30] sm:$0xff]  ;;  %v412_v38 = vmov 0.0   ;;  %v87_v15 = vlaneseq }
   0x9   :  { %v33_v23 = vld [vmem:[%s609_s1 + $0x38] sm:$0xff]  ;;  %v32_v25 = vld [vmem:[%s609_s1 + $0x30] sm:$0xff]  ;;  %v58_v26 = vsel %vm42_vm0, %v39_v19, 0.0  ;;  %v76_v32 = vld [vmem:[%s610_s2 + $0x8] sm:$0xff]  ;;  %200 = vmatprep.mubr.f32.mxu0 %v412_v38  ;;  %v413_v42 = vmov 0.0|0.0   ;;  %vm98_vm1 = vcmask 130112  }
   0xa   :  { %53 = vadd.xlane.f32.xlu1 %v52_v18  ;;  %47 = vadd.xlane.f32.xlu0 %v46_v20  ;;  %v41_v27 = vmul.f32 %v33_v23, %v25_v22  ;;  %v55_v28 = vsel %vm42_vm0, %v38_v21, 0.0  ;;  %v40_v29 = vmul.f32 %v32_v25, %v24_v24  ;;  %v78_v33 = vld [vmem:[%s610_s2 + $0x18] sm:$0xff]  ;;  %v75_v35 = vld [vmem:[%s610_s2] sm:$0xff]  ;;  %v77_v36 = vld [vmem:[%s610_s2 + $0x10] sm:$0xff]  ;;  %v88_v16 = vand.u32 127, %v87_v15  ;;  %s414_s25 = smov [#allocation2]  }
   0xb   :  { %v337_v34 = vpack.c.bf16 %v78_v33, %v76_v32  ;;  %v339_v37 = vpack.c.bf16 %v77_v36, %v75_v35  ;;  %v209_v39 = vld [vmem:[%s611_s3] sm:$0xff]  ;;  %v210_v40 = vld [vmem:[%s611_s3 + $0x8] sm:$0xff]  ;;  %v211_v41 = vld [vmem:[%s611_s3 + $0x10] sm:$0xff]  ;;  %341 = vmatprep.subr.bf16.mxu1 %v413_v42  ;;  %v90_v20 = vshrl.u32 %v87_v15, 7  ;;  %vm127_vm2 = vcmask 1041409   ;;  %s327_s26 = sshll.u32 %s414_s25, 4  ;;  %s328_s26 = int_to_ptr.vmem [resolvable:$true] %s327_s26 }
   0xc   :  { %v64_v30 = vsel %vm42_vm0, %v41_v27, 0.0  ;;  %v61_v31 = vsel %vm42_vm0, %v40_v29, 0.0  ;;  %v342_v43 = vpack.c.bf16 %v210_v40, %v209_v39  ;;  %v212_v44 = vld [vmem:[%s611_s3 + $0x18] sm:$0xff]  ;;  %v213_v46 = vld [vmem:[%s611_s3 + $0x20] sm:$0xff]  ;;  %v214_v47 = vld [vmem:[%s611_s3 + $0x28] sm:$0xff]  ;;  %v93_v19 = vadd.s32 4294967288, %v88_v16  ;;  %p393_p1 = scmp.lt.s32.totalorder %s328_s26, %s328_s26 }
   0xd   :  { %338 = vmatprep.subr.bf16.mxu0 %v337_v34  ;;  %v345_v45 = vpack.c.bf16 %v212_v44, %v211_v41  ;;  %v348_v48 = vpack.c.bf16 %v214_v47, %v213_v46  ;;  %v215_v49 = vld [vmem:[%s611_s3 + $0x30] sm:$0xff]  ;;  %v216_v50 = vld [vmem:[%s611_s3 + $0x38] sm:$0xff]  ;;  %v217_v52 = vld [vmem:[%s611_s3 + $0x40] sm:$0xff]  ;;  %vm129_vm3 = vcmask 1042434   ;;  %vm131_vm4 = vcmask 1043459  }
   0xe   :  { %59 = vadd.xlane.f32.xlu1 %v58_v26  ;;  %56 = vadd.xlane.f32.xlu0 %v55_v28  ;;  %v351_v51 = vpack.c.bf16 %v216_v50, %v215_v49  ;;  %v218_v53 = vld [vmem:[%s611_s3 + $0x48] sm:$0xff]  ;;  %v219_v55 = vld [vmem:[%s611_s3 + $0x50] sm:$0xff]  ;;  %v220_v56 = vld [vmem:[%s611_s3 + $0x58] sm:$0xff]  ;;  %v96_v23 = vsub.s32 %v93_v19, %v90_v20  ;;  %v91_v26 = vsub.s32 %v88_v16, %v90_v20  ;;  %vm133_vm5 = vcmask 130048  }
   0xf   :  { %340 = vmatpush1.bf16.msra.mxu0 %v339_v37  ;;  %343 = vmatpush1.bf16.msra.mxu1 %v342_v43  ;;  %v354_v54 = vpack.c.bf16 %v218_v53, %v217_v52  ;;  %v357_v57 = vpack.c.bf16 %v220_v56, %v219_v55  ;;  %v221_v58 = vld [vmem:[%s611_s3 + $0x60] sm:$0xff]  ;;  %v222_v59 = vld [vmem:[%s611_s3 + $0x68] sm:$0xff]  ;;  %v223_v61 = vld [vmem:[%s611_s3 + $0x70] sm:$0xff]  ;;  %vm237_vm6 = vcmask 785408   ;;  %vm319_vm9 = vcmask 109568  }
  0x10   :  { %344 = vmatprep.subr.bf16.mxu1 %v413_v42  ;;  %v360_v60 = vpack.c.bf16 %v222_v59, %v221_v58  ;;  %v224_v62 = vld [vmem:[%s611_s3 + $0x78] sm:$0xff]  ;;  %v225_v0 = vld [vmem:[%s611_s3 + $0x80] sm:$0xff]  ;;  %v226_v1 = vld [vmem:[%s611_s3 + $0x88] sm:$0xff] }
  0x11   :  { %v363_v63 = vpack.c.bf16 %v224_v62, %v223_v61  ;;  %v366_v2 = vpack.c.bf16 %v226_v1, %v225_v0  ;;  %v227_v3 = vld [vmem:[%s611_s3 + $0x90] sm:$0xff]  ;;  %v228_v4 = vld [vmem:[%s611_s3 + $0x98] sm:$0xff]  ;;  %v229_v6 = vld [vmem:[%s611_s3 + $0xa0] sm:$0xff] }
  0x12   :  { %65 = vadd.xlane.f32.xlu1 %v64_v30  ;;  %62 = vadd.xlane.f32.xlu0 %v61_v31  ;;  %v369_v5 = vpack.c.bf16 %v228_v4, %v227_v3  ;;  %v230_v7 = vld [vmem:[%s611_s3 + $0xa8] sm:$0xff]  ;;  %v231_v9 = vld [vmem:[%s611_s3 + $0xb0] sm:$0xff]  ;;  %v232_v10 = vld [vmem:[%s611_s3 + $0xb8] sm:$0xff] }
  0x13   :  { %346 = vmatpush1.bf16.msra.mxu1 %v345_v45  ;;  %v372_v8 = vpack.c.bf16 %v230_v7, %v229_v6  ;;  %v375_v11 = vpack.c.bf16 %v232_v10, %v231_v9  ;;  %v233_v12 = vld [vmem:[%s611_s3 + $0xc0] sm:$0xff]  ;;  %v234_v13 = vld [vmem:[%s611_s3 + $0xc8] sm:$0xff]  ;;  %v235_v52 = vld [vmem:[%s611_s3 + $0xd0] sm:$0xff] }
  0x14   :  { %347 = vmatprep.subr.bf16.mxu1 %v413_v42  ;;  %v378_v14 = vpack.c.bf16 %v234_v13, %v233_v12  ;;  %v236_v53 = vld [vmem:[%s611_s3 + $0xd8] sm:$0xff]  ;;  %s388_s3 = scalar_lea.vmem %s328_s26, 64 }
  0x15   :  { %p389_p0 = scmp.ne.s32.totalorder %s328_s26, %s388_s3  ;;  %p394_p2 = scmp.lt.s32.totalorder %s388_s3, %s388_s3 }
  0x17   :  { %349 = vmatpush1.bf16.msra.mxu1 %v348_v48  ;;  %p395_p3 = por %p394_p2, %p393_p1 }
  0x18   :  { %350 = vmatprep.subr.bf16.mxu1 %v413_v42 }
  0x19   :  { %p396_p4 = pnand %p395_p3, %p389_p0 }
  0x1b   :  { %352 = vmatpush1.bf16.msra.mxu1 %v351_v51 }
  0x1c   :  { %353 = vmatprep.subr.bf16.mxu1 %v413_v42 }
  0x1f   :  { %355 = vmatpush1.bf16.msra.mxu1 %v354_v54  ;;  %v381_v54 = vpack.c.bf16 %v236_v53, %v235_v52 }
  0x20   :  { %356 = vmatprep.subr.bf16.mxu1 %v413_v42 }
  0x23   :  { %358 = vmatpush1.bf16.msra.mxu1 %v357_v57 }
  0x24   :  { %359 = vmatprep.subr.bf16.mxu1 %v413_v42 }
  0x27   :  { %361 = vmatpush1.bf16.msra.mxu1 %v360_v60 }
  0x28   :  { %362 = vmatprep.subr.bf16.mxu1 %v413_v42 }
  0x2b   :  { %364 = vmatpush1.bf16.msra.mxu1 %v363_v63 }
  0x2c   :  { %365 = vmatprep.subr.bf16.mxu1 %v413_v42 }
  0x2f   :  { %367 = vmatpush1.bf16.msra.mxu1 %v366_v2 }
  0x30   :  { %368 = vmatprep.subr.bf16.mxu1 %v413_v42 }
  0x33   :  { %370 = vmatpush1.bf16.msra.mxu1 %v369_v5 }
  0x34   :  { %371 = vmatprep.subr.bf16.mxu1 %v413_v42 }
  0x37   :  { %373 = vmatpush1.bf16.msra.mxu1 %v372_v8 }
  0x38   :  { %374 = vmatprep.subr.bf16.mxu1 %v413_v42 }
  0x3b   :  { %376 = vmatpush1.bf16.msra.mxu1 %v375_v11 }
  0x3c   :  { %377 = vmatprep.subr.bf16.mxu1 %v413_v42 }
  0x3f   :  { %379 = vmatpush1.bf16.msra.mxu1 %v378_v14 }
  0x40   :  { %380 = vmatprep.subr.bf16.mxu1 %v413_v42 }
  0x43   :  { %382 = vmatpush1.bf16.msra.mxu1 %v381_v54 }
  0x93   :  { %v51_v17 = vpop.xlane.xlu1 %50  ;;  %v45_v18 = vpop.xlane.xlu0 %44 }
  0x94   :  { %v69_v27 = vsub.f32 0.0, %v51_v17  ;;  %v67_v28 = vsub.f32 0.0, %v45_v18 }
  0x96   :  { %v103_v36 = vrot.slane %v69_v27, %v91_v26  ;;  %v92_v37 = vrot.slane %v67_v28, %v91_v26 }
  0x97   :  { %v54_v21 = vpop.xlane.xlu1 %53  ;;  %v48_v22 = vpop.xlane.xlu0 %47 }
  0x98   :  { %v70_v24 = vsub.f32 0.0, %v54_v21  ;;  %v68_v25 = vsub.f32 0.0, %v48_v22 }
  0x9a   :  { %v107_v32 = vrot.slane %v70_v24, %v96_v23  ;;  %v97_v33 = vrot.slane %v68_v25, %v96_v23 }
  0x9b   :  { %v60_v29 = vpop.xlane.xlu1 %59  ;;  %v57_v31 = vpop.xlane.xlu0 %56 }
  0x9c   :  { %v72_v30 = vsub.f32 0.0, %v60_v29  ;;  %v71_v34 = vsub.f32 0.0, %v57_v31  ;;  %v108_v42 = vsel %vm98_vm1, %v107_v32, %v103_v36  ;;  %v99_v43 = vsel %vm98_vm1, %v97_v33, %v92_v37 }
  0x9d   :  { %v128_v48 = vsel %vm127_vm2, %v108_v42, %v99_v43 }
  0x9e   :  { %v116_v35 = vrot.slane %v72_v30, %v96_v23  ;;  %v112_v38 = vrot.slane %v71_v34, %v91_v26 }
  0x9f   :  { %v66_v39 = vpop.xlane.xlu1 %65  ;;  %v63_v41 = vpop.xlane.xlu0 %62 }
  0xa0   :  { %v74_v40 = vsub.f32 0.0, %v66_v39  ;;  %v73_v44 = vsub.f32 0.0, %v63_v41  ;;  %v117_v45 = vsel %vm98_vm1, %v116_v35, %v112_v38 }
  0xa1   :  { %v130_v50 = vsel %vm129_vm3, %v117_v45, %v128_v48 }
  0xa2   :  { %v125_v46 = vrot.slane %v74_v40, %v96_v23  ;;  %v121_v47 = vrot.slane %v73_v44, %v91_v26 }
  0xa4   :  { %v126_v49 = vsel %vm98_vm1, %v125_v46, %v121_v47 }
  0xa5   :  { %v132_v51 = vsel %vm131_vm4, %v126_v49, %v130_v50 }
  0xa6   :  { %335 = vmatmul.mubr.msk.f32.vlgmr.msra.gmra.mrb[0].mxu0 %vm133_vm5, %v132_v51 }
 0x179   :  { %v202_v55 = vpop.f32.mrb[0].mxu0 }
 0x17a   :  { %v204_v56 = vpop.f32.mrb[1].mxu0  ;;  %v207_v58 = vmul.f32 %v202_v55, %v202_v55 }
 0x17b   :  { %v208_v57 = vmul.f32 %v204_v56, %v204_v56 }
 0x17d   :  { %336 = vmatprep.mubr.msk.f32.mxu1 %vm237_vm6, %v208_v57 }
 0x17e   :  { %306 = vmatmul.mubr.f32.vlgmr.msra.gmra.mrb[0].mxu1 %v207_v58 }
 0x251   :  { %v307_v59 = vpop.f32.mrb[0].mxu1 }
 0x252   :  { %386 = vrsqrt.f32 %v307_v59  ;;  %v309_v60 = vpop.f32.mrb[1].mxu1  ;;  %vm313_vm7 = vcmp.eq.f32.partialorder %v307_v59, inf  ;;  %v316_v63 = vand.u32 2147483648, %v307_v59  ;;  %vm315_vm8 = vcmp.eq.f32.partialorder %v307_v59, 0.0 }
 0x25c   :  { %v387_v61 = vpop.eup %386 }
 0x25d   :  { %v312_v62 = vmul.f32 %v387_v61, %v307_v59 }
 0x25f   :  { %v314_v0 = vsel %vm313_vm7, %v307_v59, %v312_v62 }
 0x260   :  { %v317_v1 = vsel %vm315_vm8, %v316_v63, %v314_v0 }
 0x261   :  { %v318_v2 = vmul.f32 -50.0, %v317_v1 }
 0x263   :  { %320 = vst.msk [vmem:[#allocation2] sm:$0xf] %vm319_vm9, %v318_v2 }
 0x264   :  { %399 = shalt.err (!%p396_p4)
}
 0x265   :  { %s400_s29 = scalar_lea.hbm %s612_s4, 64 }
 0x266   :  { %p401_p5 = scmp.ne.s32.totalorder %s612_s4, %s400_s29  ;;  %p404_p6 = scmp.lt.u32.totalorder %s400_s29, %s612_s4 }
 0x268   :  { %p406_p7 = pnand %p404_p6, %p401_p5 }
 0x26a   :  { %409 = shalt.err (!%p406_p7)
}
 0x26b   :  { %330 = dma.vmem_to_hbm [thread:$0]  %s328_s26, 64, %s612_s4, [#allocation3]  }
 0x26c   :  { %410 = dma.done.wait [#allocation3], 64  }
 0x26d   :  { %411 = vsyncadd [#allocation3], 4294967232 }
 0x26e   :  { %334 = vsyncpa [#allocation3], 1 }

</bundles_post_ra>
